<compile_context>
chip_gen: v7x
topology: tpu7x:2x2x1
jax: 0.10.0
libtpu: 0.0.40
codegen_flags: <defaults>
</compile_context>

<pallas_src>
import functools
import math

import jax
import jax.numpy as jnp
from jax.experimental import pallas as pl
from jax.experimental.pallas import tpu as pltpu

_HALF_LOG_2PI = 0.5 * math.log(2.0 * math.pi)


def _vmem_budget():
    """Return (per-input block byte budget, scoped vmem_limit_bytes) by generation."""
    cap = None
    try:
        cap = pltpu.get_tpu_info().vmem_capacity_bytes
    except Exception:
        cap = None
    if cap is not None and cap >= 100 * 1024 * 1024:
        # v5e/v6e: 128 MiB physical VMEM -> 8 MiB blocks (3 inputs x 2 bufs = 48 MiB).
        return 8 * 1024 * 1024, 80 * 1024 * 1024
    # v7x (64 MiB physical) or unknown: 4 MiB blocks (24 MiB of input buffers).
    return 4 * 1024 * 1024, 40 * 1024 * 1024


def _gaussian_nll_partial_kernel(x_ref, mu_ref, sigma_ref, out_ref, *,
                                 block_rows, lane, valid_rows, need_mask,
                                 approx_recip):
    x = x_ref[...].astype(jnp.float32)
    mu = mu_ref[...].astype(jnp.float32)
    sigma = sigma_ref[...].astype(jnp.float32)

    inv_sigma = pl.reciprocal(sigma, approx=approx_recip)   # EUP, off the VALU path
    z = (x - mu) * inv_sigma
    # NOTE: the constant 0.5*log(2*pi) is hoisted into the wrapper; masked tail rows
    # therefore contribute exactly 0 to the partial sums.  Keep that invariant.
    nll = 0.5 * (z * z) + jnp.log(sigma)

    if need_mask:
        # Tail rows of the last (partial) block read uninitialized VMEM, so log /
        # reciprocal may produce NaN/Inf there.  jnp.where is a true select, so those
        # values are discarded -- do NOT replace this with a multiply-by-mask.
        row0 = pl.program_id(0) * block_rows
        rid = row0 + jax.lax.broadcasted_iota(jnp.int32, (block_rows, 1), 0)
        nll = jnp.where(rid < valid_rows, nll, 0.0)

    if block_rows > 8 and block_rows % 8 == 0:
        # VPU-only tree add of full (8, lane) tiles (no per-step cross-lane reduce).
        partial = nll.reshape(block_rows // 8, 8, lane).sum(axis=0)
    else:
        partial = nll
    out_ref[0, :, :] = partial


def gaussian_loss(x, mu, sigma, *, approx_reciprocal=False,
                  min_pallas_elements=1 << 20):
    """Mean-over-(dim0*dim1) negative Gaussian log-likelihood (matches GaussianLoss)."""
    shape = jnp.broadcast_shapes(jnp.shape(x), jnp.shape(mu), jnp.shape(sigma))
    assert len(shape) >= 2, "GaussianLoss divides by size(0) * size(1)"
    x = jnp.broadcast_to(x, shape)
    mu = jnp.broadcast_to(mu, shape)
    sigma = jnp.broadcast_to(sigma, shape)

    n = math.prod(shape)
    denom = float(shape[0] * shape[1])

    # Small-n fast path: dispatch + second reduction dominate below ~1M elements.
    if n < min_pallas_elements:
        xf = x.astype(jnp.float32)
        muf = mu.astype(jnp.float32)
        sgf = sigma.astype(jnp.float32)
        z = (xf - muf) / sgf
        nll = 0.5 * z * z + jnp.log(sgf)
        return (jnp.sum(nll) + n * _HALF_LOG_2PI) / denom

    # Lane-dense presentation.  If n isn't 128-divisible, keep the natural trailing
    # dim (full-extent lane) instead of materializing padded copies in HBM.
    lane = None
    for cand in (512, 256, 128):
        if n % cand == 0:
            lane = cand
            break
    if lane is None:
        lane = shape[-1]
    rows = n // lane

    x2 = x.reshape(rows, lane)
    mu2 = mu.reshape(rows, lane)
    sg2 = sigma.reshape(rows, lane)

    itemsizes = [jnp.dtype(a.dtype).itemsize for a in (x2, mu2, sg2)]
    sub = max(8, 32 // min(itemsizes))            # sublane packing multiple (8/16/32)
    block_budget, vmem_limit = _vmem_budget()
    lane_vmem = ((lane + 127) // 128) * 128
    max_block_rows = max(
        sub, (block_budget // (lane_vmem * max(itemsizes))) // sub * sub)

    if rows <= sub:
        block_rows = rows                          # single block, full row extent
    else:
        # Guarantee >= 2 grid steps so both v7x TensorCores get work; pick the largest
        # tile that fits the per-generation budget otherwise.
        half = ((rows + 1) // 2 + sub - 1) // sub * sub
        block_rows = max(sub, min(max_block_rows, half))

    grid = pl.cdiv(rows, block_rows)
    need_mask = (rows % block_rows) != 0
    pr = 8 if (block_rows % 8 == 0 and block_rows >= 8) else block_rows

    kernel = functools.partial(
        _gaussian_nll_partial_kernel,
        block_rows=block_rows, lane=lane, valid_rows=rows,
        need_mask=need_mask, approx_recip=approx_reciprocal)

    in_spec = pl.BlockSpec((block_rows, lane), lambda i: (i, 0))

    partials = pl.pallas_call(
        kernel,
        out_shape=jax.ShapeDtypeStruct((grid, pr, lane), jnp.float32),
        grid_spec=pltpu.PrefetchScalarGridSpec(
            num_scalar_prefetch=0,
            grid=(grid,),
            in_specs=[in_spec, in_spec, in_spec],
            out_specs=pl.BlockSpec((1, pr, lane), lambda i: (i, 0, 0)),
        ),
        compiler_params=pltpu.CompilerParams(
            dimension_semantics=("parallel",),
            vmem_limit_bytes=vmem_limit,
        ),
        cost_estimate=pl.CostEstimate(
            flops=6 * n,
            transcendentals=2 * n,
            bytes_accessed=n * sum(itemsizes) + grid * pr * lane * 4,
        ),
    )(x2, mu2, sg2)

    # Single cross-lane reduce in the wrapper + hoisted constant term.
    return (jnp.sum(partials) + n * _HALF_LOG_2PI) / denom


def _reference(x, mu, sigma):
    xf = x.astype(jnp.float32)
    muf = mu.astype(jnp.float32)
    sgf = sigma.astype(jnp.float32)
    z = (xf - muf) / sgf
    nll = 0.5 * z * z + jnp.log(sgf) + 0.5 * jnp.log(2.0 * jnp.pi)
    return jnp.sum(nll) / (x.shape[0] * x.shape[1])


def _make_inputs(key, shape, dtype=jnp.float32):
    kx, kmu, ksg = jax.random.split(key, 3)
    x = jax.random.normal(kx, shape, dtype=jnp.float32)
    mu = 0.1 * jax.random.normal(kmu, shape, dtype=jnp.float32)
    sigma = 0.5 + jax.nn.softplus(jax.random.normal(ksg, shape, dtype=jnp.float32))
    return x.astype(dtype), mu.astype(dtype), sigma.astype(dtype)


if __name__ == "__main__":
    key = jax.random.PRNGKey(0)
    k1, k2, k3, k4 = jax.random.split(key, 4)

    # 1) Small shape implied by the module: (batch, seq, feature).  rows=1 path.
    x, mu, sigma = _make_inputs(k1, (2, 8, 32))
    out = jax.block_until_ready(gaussian_loss(x, mu, sigma, min_pallas_elements=0))
    ref = _reference(x, mu, sigma)
    assert jnp.allclose(out, ref, rtol=1e-4, atol=1e-5), (out, ref)

    # 1b) Default small-n fast path (plain fused jnp, no pallas dispatch).
    out_fp = jax.block_until_ready(gaussian_loss(x, mu, sigma))
    assert jnp.allclose(out_fp, ref, rtol=1e-4, atol=1e-5), (out_fp, ref)

    # 2) Multi-block grid (>=2 steps for megacore) + tail-row masking: rows=100, block=56.
    x2, mu2, sg2 = _make_inputs(k2, (4, 25, 512))
    out2 = jax.block_until_ready(gaussian_loss(x2, mu2, sg2, min_pallas_elements=0))
    ref2 = _reference(x2, mu2, sg2)
    assert jnp.allclose(out2, ref2, rtol=1e-4, atol=1e-5), (out2, ref2)

    # 2b) Opt-in approx reciprocal (v7x EUP-relief lever); ~2^-12 rel error -> loose tol.
    out2a = jax.block_until_ready(
        gaussian_loss(x2, mu2, sg2, min_pallas_elements=0, approx_reciprocal=True))
    assert jnp.allclose(out2a, ref2, rtol=2e-3, atol=1e-4), (out2a, ref2)

    # 3) bf16 inputs: streamed at 2 bytes/elem, upcast to f32 inside the kernel.
    x3, mu3, sg3 = _make_inputs(k3, (2, 16, 48), dtype=jnp.bfloat16)
    out3 = jax.block_until_ready(gaussian_loss(x3, mu3, sg3, min_pallas_elements=0))
    ref3 = _reference(x3, mu3, sg3)
    assert jnp.allclose(out3, ref3, rtol=1e-4, atol=1e-5), (out3, ref3)

    # 4) Element count not divisible by 128: natural trailing-dim lane, no padding copy.
    x4, mu4, sg4 = _make_inputs(k4, (3, 5, 7))
    out4 = jax.block_until_ready(gaussian_loss(x4, mu4, sg4, min_pallas_elements=0))
    ref4 = _reference(x4, mu4, sg4)
    assert jnp.allclose(out4, ref4, rtol=1e-4, atol=1e-5), (out4, ref4)

    print("KERNEL_OK")
</pallas_src>

<mosaic_0001>
module attributes {stable_mosaic.version = 11 : i64} {
  func.func @_gaussian_nll_partial_kernel(%arg0: i32, %arg1: memref<1x512xf32, #tpu.memory_space<vmem>>, %arg2: memref<1x512xf32, #tpu.memory_space<vmem>>, %arg3: memref<1x512xf32, #tpu.memory_space<vmem>>, %arg4: memref<1x1x512xf32, #tpu.memory_space<vmem>>) attributes {dimension_semantics = [#tpu.dimension_semantics<parallel>], iteration_bounds = array<i64: 1>, scalar_prefetch = 0 : i64, scratch_operands = 0 : i64, tpu.core_type = #tpu.core_type<tc>, window_params = [{transform_indices = @transform_0, window_bounds = array<i64: 1, 512>}, {transform_indices = @transform_1, window_bounds = array<i64: 1, 512>}, {transform_indices = @transform_2, window_bounds = array<i64: 1, 512>}, {transform_indices = @transform_3, window_bounds = array<i64: 1, 1, 512>}]} {
    %c0 = arith.constant 0 : index
    %c0_0 = arith.constant 0 : index
    %0 = vector.load %arg1[%c0, %c0_0] : memref<1x512xf32, #tpu.memory_space<vmem>>, vector<1x512xf32>
    %c0_1 = arith.constant 0 : index
    %c0_2 = arith.constant 0 : index
    %1 = vector.load %arg2[%c0_1, %c0_2] : memref<1x512xf32, #tpu.memory_space<vmem>>, vector<1x512xf32>
    %c0_3 = arith.constant 0 : index
    %c0_4 = arith.constant 0 : index
    %2 = vector.load %arg3[%c0_3, %c0_4] : memref<1x512xf32, #tpu.memory_space<vmem>>, vector<1x512xf32>
    %3 = tpu.reciprocal %2 : vector<1x512xf32> -> vector<1x512xf32>
    %4 = arith.subf %0, %1 : vector<1x512xf32>
    %5 = arith.mulf %4, %3 : vector<1x512xf32>
    %6 = arith.mulf %5, %5 : vector<1x512xf32>
    %cst = arith.constant 5.000000e-01 : f32
    %7 = vector.broadcast %cst : f32 to vector<1x512xf32>
    %8 = arith.mulf %7, %6 : vector<1x512xf32>
    %9 = math.log %2 : vector<1x512xf32>
    %10 = arith.addf %8, %9 : vector<1x512xf32>
    %c0_5 = arith.constant 0 : index
    %c0_6 = arith.constant 0 : index
    %c0_7 = arith.constant 0 : index
    %11 = vector.load %arg4[%c0_5, %c0_6, %c0_7] : memref<1x1x512xf32, #tpu.memory_space<vmem>>, vector<1x1x512xf32>
    %12 = vector.shape_cast %11 : vector<1x1x512xf32> to vector<1x512xf32>
    %13 = vector.shape_cast %10 : vector<1x512xf32> to vector<1x1x512xf32>
    tpu.vector_store %arg4[%c0_5, %c0_6, %c0_7], %13 {strides = array<i32>} : memref<1x1x512xf32, #tpu.memory_space<vmem>>, vector<1x1x512xf32>,
    return
  }
  func.func @transform_0(%arg0: i32) -> (i32, i32) {
    %c0_i32 = arith.constant 0 : i32
    %c0_i32_0 = arith.constant 0 : i32
    return %arg0, %c0_i32 : i32, i32
  }
  func.func @transform_1(%arg0: i32) -> (i32, i32) {
    %c0_i32 = arith.constant 0 : i32
    %c0_i32_0 = arith.constant 0 : i32
    return %arg0, %c0_i32 : i32, i32
  }
  func.func @transform_2(%arg0: i32) -> (i32, i32) {
    %c0_i32 = arith.constant 0 : i32
    %c0_i32_0 = arith.constant 0 : i32
    return %arg0, %c0_i32 : i32, i32
  }
  func.func @transform_3(%arg0: i32) -> (i32, i32, i32) {
    %c0_i32 = arith.constant 0 : i32
    %c0_i32_0 = arith.constant 0 : i32
    %c0_i32_1 = arith.constant 0 : i32
    return %arg0, %c0_i32, %c0_i32_0 : i32, i32, i32
  }
}

</mosaic_0001>

<bundles_post_ra>
// kernel: tpu_custom_call.1
= control target key start
LH: loop header
LB: loop body
LE: loop exit
PB: predicated region body
PF: predicated region fallthrough
CT: control target
= control target key end

     0   :  { %8 = vsyncpa [#allocation3], 0  ;;  %s212_s0 = inlined_call_operand.hbm [shape: f32[1,512], index: 0, kind: input, shape index: {}]   ;;  %s213_s1 = inlined_call_operand.hbm [shape: f32[1,512], index: 1, kind: input, shape index: {}]   ;;  %s214_s2 = inlined_call_operand.vmem [shape: f32[1,512], index: 2, kind: input, shape index: {}]   ;;  %s215_s3 = inlined_call_operand.hbm [shape: f32[1,1,512], index: 3, kind: output, shape index: {}]  }
   0x1   :  { %9 = vsyncpa [#allocation6], 0 }
   0x2   :  { %10 = vsyncpa [#allocation4], 0  ;;  %s150_s12 = smov [#allocation2]   ;;  %s151_s14 = smov [#allocation5]  }
   0x3   :  { %s17_s13 = sshll.u32 %s150_s12, 4  ;;  %s27_s15 = sshll.u32 %s151_s14, 4  ;;  %s18_s13 = int_to_ptr.vmem [resolvable:$true] %s17_s13  ;;  %s28_s15 = int_to_ptr.vmem [resolvable:$true] %s27_s15 }
   0x4   :  { %s78_s18 = scalar_lea.hbm %s212_s0, 64 }
   0x5   :  { %p79_p0 = scmp.ne.s32.totalorder %s212_s0, %s78_s18  ;;  %p82_p1 = scmp.lt.u32.totalorder %s78_s18, %s212_s0 }
   0x7   :  { %p84_p2 = pnand %p82_p1, %p79_p0 }
   0x9   :  { %87 = shalt.err (!%p84_p2)
}
   0xa   :  { %s88_s23 = scalar_lea.vmem %s18_s13, 64  ;;  %p93_p4 = scmp.lt.s32.totalorder %s18_s13, %s18_s13 }
   0xb   :  { %p89_p3 = scmp.ne.s32.totalorder %s18_s13, %s88_s23  ;;  %p94_p5 = scmp.lt.s32.totalorder %s88_s23, %s88_s23 }
   0xd   :  { %p95_p6 = por %p94_p5, %p93_p4 }
   0xf   :  { %p96_p7 = pnand %p95_p6, %p89_p3 }
  0x11   :  { %99 = shalt.err (!%p96_p7)
}
  0x12   :  { %20 = dma.hbm_to_vmem [thread:$0]  %s212_s0, 64, %s18_s13, [#allocation3]  }
  0x13   :  { %s100_s28 = scalar_lea.hbm %s213_s1, 64 }
  0x14   :  { %p101_p8 = scmp.ne.s32.totalorder %s213_s1, %s100_s28  ;;  %p104_p9 = scmp.lt.u32.totalorder %s100_s28, %s213_s1 }
  0x16   :  { %p106_p10 = pnand %p104_p9, %p101_p8 }
  0x18   :  { %109 = shalt.err (!%p106_p10)
}
  0x19   :  { %s110_s6 = scalar_lea.vmem %s28_s15, 64  ;;  %p115_p12 = scmp.lt.s32.totalorder %s28_s15, %s28_s15 }
  0x1a   :  { %p111_p11 = scmp.ne.s32.totalorder %s28_s15, %s110_s6  ;;  %p116_p13 = scmp.lt.s32.totalorder %s110_s6, %s110_s6 }
  0x1c   :  { %p117_p0 = por %p116_p13, %p115_p12 }
  0x1e   :  { %p118_p1 = pnand %p117_p0, %p111_p11 }
  0x20   :  { %121 = shalt.err (!%p118_p1)
}
  0x21   :  { %30 = dma.hbm_to_vmem [thread:$0]  %s213_s1, 64, %s28_s15, [#allocation6]  }
  0x22   :  { %144 = dma.done.wait [#allocation3], 64  }
  0x23   :  { %145 = vsyncadd [#allocation3], 4294967232 }
  0x24   :  { %146 = dma.done.wait [#allocation6], 64  }
  0x25   :  { %147 = vsyncadd [#allocation6], 4294967232  ;;  %v41_v0 = vld [vmem:[%s214_s2] sm:$0xf]  ;;  %v40_v2 = vld [vmem:[#allocation5] sm:$0xf]  ;;  %v50_v7 = vlaneseq }
  0x26   :  { %74 = vrcp.f32 %v41_v0  ;;  %v39_v1 = vld [vmem:[#allocation2] sm:$0xf]  ;;  %s152_s1 = smov [#allocation7]  }
  0x27   :  { %76 = vlog2.f32 %v41_v0  ;;  %v43_v3 = vsub.f32 %v39_v1, %v40_v2  ;;  %s61_s10 = sshll.u32 %s152_s1, 4  ;;  %vm52_vm0 = vcmp.lt.s32.totalorder %v50_v7, 512  ;;  %s62_s10 = int_to_ptr.vmem [resolvable:$true] %s61_s10 }
  0x28   :  { %s122_s11 = scalar_lea.vmem %s62_s10, 64  ;;  %p127_p3 = scmp.lt.s32.totalorder %s62_s10, %s62_s10 }
  0x29   :  { %p123_p2 = scmp.ne.s32.totalorder %s62_s10, %s122_s11  ;;  %p128_p4 = scmp.lt.s32.totalorder %s122_s11, %s122_s11 }
  0x2b   :  { %p129_p5 = por %p128_p4, %p127_p3 }
  0x2d   :  { %p130_p6 = pnand %p129_p5, %p123_p2 }
  0x30   :  { %v75_v4 = vpop.eup %74 }
  0x31   :  { %v77_v5 = vpop.eup %76  ;;  %v44_v6 = vmul.f32 %v75_v4, %v43_v3 }
  0x32   :  { %v48_v9 = vmul.f32 0.6931472, %v77_v5 }
  0x33   :  { %v45_v8 = vmul.f32 %v44_v6, %v44_v6 }
  0x35   :  { %v46_v10 = vmul.f32 0.5, %v45_v8 }
  0x37   :  { %v49_v11 = vadd.f32 %v48_v9, %v46_v10 }
  0x39   :  { %54 = vst.msk [vmem:[#allocation7] sm:$0xf] %vm52_vm0, %v49_v11 }
  0x3a   :  { %133 = shalt.err (!%p130_p6)
}
  0x3b   :  { %s134_s13 = scalar_lea.hbm %s215_s3, 64 }
  0x3c   :  { %p135_p7 = scmp.ne.s32.totalorder %s215_s3, %s134_s13  ;;  %p138_p8 = scmp.lt.u32.totalorder %s134_s13, %s215_s3 }
  0x3e   :  { %p140_p9 = pnand %p138_p8, %p135_p7 }
  0x40   :  { %143 = shalt.err (!%p140_p9)
}
  0x41   :  { %64 = dma.vmem_to_hbm [thread:$0]  %s62_s10, 64, %s215_s3, [#allocation4]  }
  0x42   :  { %148 = dma.done.wait [#allocation4], 64  }
  0x43   :  { %149 = vsyncadd [#allocation4], 4294967232 }
  0x44   :  { %68 = vsyncpa [#allocation3], 1 }
  0x45   :  { %69 = vsyncpa [#allocation6], 1 }
  0x46   :  { %70 = vsyncpa [#allocation4], 1 }

</bundles_post_ra>
